<compile_context>
chip_gen: v5e
topology: v5e:2x2
jax: 0.10.0
libtpu: 0.0.40
codegen_flags: <defaults>
</compile_context>

<pallas_src>
import functools

import jax
import jax.numpy as jnp
from jax.experimental import pallas as pl
from jax.experimental.pallas import tpu as pltpu


def _round_up(x, m):
    return ((x + m - 1) // m) * m


def _matmul_stats_kernel(a_ref, w_ref, y_ref, stats_ref):
    """Phase 1: one im2col matmul per row tile + per-tile BN partial sums.

    a_ref:     (TM, CKp)    bf16 im2col rows (lane-dense, zero-padded)
    w_ref:     (CKp, COp)   bf16 folded conv weight (resident across grid)
    y_ref:     (TM, COp)    bf16 conv output tile
    stats_ref: (2, COp)     f32 [sum; sum of squares] for this tile
    """
    acc = jnp.dot(a_ref[...], w_ref[...], preferred_element_type=jnp.float32)
    y_ref[...] = acc.astype(y_ref.dtype)
    stats_ref[0:1, :] = jnp.sum(acc, axis=0, keepdims=True)
    stats_ref[1:2, :] = jnp.sum(acc * acc, axis=0, keepdims=True)


def _bn_relu_kernel(scale_ref, shift_ref, y_ref, out_ref):
    """Phase 2: streaming fused BN (folded scale/shift) + ReLU on a lane-dense tile.

    scale_ref, shift_ref: (1, COp) f32 folded per-channel scale / shift
    y_ref:                (TM, COp) bf16 conv output tile
    out_ref:              (TM, COp) output tile (model dtype)
    """
    y = y_ref[...].astype(jnp.float32)
    out_ref[...] = jnp.maximum(y * scale_ref[...] + shift_ref[...], 0.0).astype(out_ref.dtype)


def _vmem_limit(block_bytes):
    """Double-buffered block footprint + headroom, capped below physical VMEM."""
    cap = 48 << 20  # safe default (v7x has 64 MiB per TensorCore)
    try:
        cap = int(pltpu.get_tpu_info().vmem_capacity_bytes * 3 // 4)
    except Exception:
        pass
    need = 2 * block_bytes + (4 << 20)
    return int(min(max(need, 8 << 20), cap))


def aspp_forward(x_nchw, weight_oihw, gamma, beta, *, padding, dilation, eps=1e-5,
                 compute_dtype=jnp.bfloat16, tm=256):
    """Pallas implementation of ASPPBlock.forward. NCHW in, NCHW out."""
    N, Cin, H, W = x_nchw.shape
    Cout, Cin_w, K, K2 = weight_oihw.shape
    assert Cin == Cin_w and K == K2
    Ho = H + 2 * padding - dilation * (K - 1)
    Wo = W + 2 * padding - dilation * (K - 1)
    out_dtype = x_nchw.dtype

    CK = K * K * Cin
    CKp = _round_up(CK, 128)            # contraction dim, lane-dense
    COp = _round_up(Cout, 128)          # output channel dim, lane-dense
    rows = N * Ho * Wo                  # total output pixels (true BN count)
    TM = max(8, min(tm, _round_up(rows, 8)))
    num_tiles = pl.cdiv(rows, TM)
    rows_pad = num_tiles * TM
    cbytes = jnp.dtype(compute_dtype).itemsize

    # ---- wrapper glue: layout, zero padding, im2col, weight fold, channel padding ----
    x_nhwc = jnp.transpose(x_nchw, (0, 2, 3, 1)).astype(compute_dtype)
    x_pad = jnp.pad(x_nhwc, ((0, 0), (padding, padding), (padding, padding), (0, 0)))
    # im2col: for each (kh, kw) tap take the shifted (N, Ho, Wo, Cin) window and stack
    # along channels -> (N*Ho*Wo, K*K*Cin); tap order (kh major, kw, cin minor) matches
    # the weight repack below.
    taps = []
    for kh in range(K):
        for kw in range(K):
            taps.append(jax.lax.slice(
                x_pad,
                (0, kh * dilation, kw * dilation, 0),
                (N, kh * dilation + Ho, kw * dilation + Wo, Cin)))
    a = jnp.concatenate(taps, axis=-1).reshape(rows, CK)
    a = jnp.pad(a, ((0, rows_pad - rows), (0, CKp - CK)))                 # zero rows/cols

    # (Cout, Cin, K, K) -> (K, K, Cin, Cout) -> (K*K*Cin, Cout), padded to (CKp, COp).
    w_mat = jnp.transpose(weight_oihw, (2, 3, 1, 0)).reshape(CK, Cout).astype(compute_dtype)
    w_mat = jnp.pad(w_mat, ((0, CKp - CK), (0, COp - Cout)))

    gamma_p = jnp.pad(gamma.astype(jnp.float32), (0, COp - Cout), constant_values=1.0)
    beta_p = jnp.pad(beta.astype(jnp.float32), (0, COp - Cout))

    # ---- phase 1: conv-as-matmul + per-tile BN partial stats (grid over row tiles) ----
    p1_block_bytes = (TM * CKp * cbytes        # im2col tile
                      + CKp * COp * cbytes     # weight (resident)
                      + TM * COp * cbytes      # conv output tile
                      + 2 * COp * 4)           # stats tile
    y_flat, stats = pl.pallas_call(
        _matmul_stats_kernel,
        grid=(num_tiles,),
        in_specs=[
            pl.BlockSpec((TM, CKp), lambda t: (t, 0)),
            pl.BlockSpec((CKp, COp), lambda t: (0, 0)),
        ],
        out_specs=[
            pl.BlockSpec((TM, COp), lambda t: (t, 0)),
            pl.BlockSpec((None, 2, COp), lambda t: (t, 0, 0)),
        ],
        out_shape=[
            jax.ShapeDtypeStruct((rows_pad, COp), compute_dtype),
            jax.ShapeDtypeStruct((num_tiles, 2, COp), jnp.float32),
        ],
        compiler_params=pltpu.CompilerParams(
            dimension_semantics=("parallel",),
            vmem_limit_bytes=_vmem_limit(p1_block_bytes)),
    )(a, w_mat)

    # ---- BN finalize (hoisted, O(Cout) work): fold gamma/beta into scale/shift ----
    st = jnp.sum(stats, axis=0)                                # (2, COp)
    inv_count = 1.0 / float(rows)                              # padded rows contribute 0
    mean = st[0] * inv_count
    var = jnp.maximum(st[1] * inv_count - mean * mean, 0.0)    # guard f32 cancellation
    inv_std = jax.lax.rsqrt(var + eps)
    scale = (inv_std * gamma_p).reshape(1, COp)
    shift = (beta_p - mean * inv_std * gamma_p).reshape(1, COp)

    # ---- phase 2: streaming BN-apply + ReLU (grid over row tiles, lane-dense) ----
    p2_block_bytes = (2 * COp * 4                              # scale + shift (resident)
                      + TM * COp * cbytes                      # conv output tile
                      + TM * COp * jnp.dtype(out_dtype).itemsize)
    out_flat = pl.pallas_call(
        _bn_relu_kernel,
        grid=(num_tiles,),
        in_specs=[
            pl.BlockSpec((1, COp), lambda t: (0, 0)),
            pl.BlockSpec((1, COp), lambda t: (0, 0)),
            pl.BlockSpec((TM, COp), lambda t: (t, 0)),
        ],
        out_specs=pl.BlockSpec((TM, COp), lambda t: (t, 0)),
        out_shape=jax.ShapeDtypeStruct((rows_pad, COp), out_dtype),
        compiler_params=pltpu.CompilerParams(
            dimension_semantics=("parallel",),
            vmem_limit_bytes=_vmem_limit(p2_block_bytes)),
    )(scale, shift, y_flat)

    out_nhwc = out_flat[:rows, :Cout].reshape(N, Ho, Wo, Cout)
    return jnp.transpose(out_nhwc, (0, 3, 1, 2))


def aspp_reference(x_nchw, weight_oihw, gamma, beta, *, padding, dilation, eps=1e-5):
    """Pure-JAX reference matching the PyTorch module's forward (train-mode BN)."""
    y = jax.lax.conv_general_dilated(
        x_nchw, weight_oihw, window_strides=(1, 1),
        padding=[(padding, padding), (padding, padding)],
        rhs_dilation=(dilation, dilation),
        dimension_numbers=("NCHW", "OIHW", "NCHW"))
    mean = jnp.mean(y, axis=(0, 2, 3), keepdims=True)
    var = jnp.mean((y - mean) ** 2, axis=(0, 2, 3), keepdims=True)
    yn = (y - mean) * jax.lax.rsqrt(var + eps)
    yn = yn * gamma.reshape(1, -1, 1, 1) + beta.reshape(1, -1, 1, 1)
    return jnp.maximum(yn, 0.0)


if __name__ == "__main__":
    # ASPPBlock(in_channels=4, out_channels=8, kernel_size=3, padding=2, dilation=2)
    # applied to x of shape (2, 4, 16, 16).
    N, Cin, H, W = 2, 4, 16, 16
    Cout, K, padding, dilation = 8, 3, 2, 2

    key = jax.random.PRNGKey(0)
    kx, kw = jax.random.split(key)
    x = jax.random.normal(kx, (N, Cin, H, W), dtype=jnp.float32)

    # Deterministic kaiming_normal_-style init: std = sqrt(2 / fan_in), fan_in = Cin*K*K.
    std = (2.0 / (Cin * K * K)) ** 0.5
    weight = jax.random.normal(kw, (Cout, Cin, K, K), dtype=jnp.float32) * std
    gamma = jnp.ones((Cout,), dtype=jnp.float32)   # BN weight filled with 1
    beta = jnp.zeros((Cout,), dtype=jnp.float32)   # BN bias zeroed

    out = aspp_forward(x, weight, gamma, beta, padding=padding, dilation=dilation)
    out = jax.block_until_ready(out)

    ref = aspp_reference(x, weight, gamma, beta, padding=padding, dilation=dilation)
    assert out.shape == (N, Cout, H, W), out.shape
    max_err = float(jnp.max(jnp.abs(out - ref)))
    # bf16 conv operands / bf16 intermediate (f32 accumulation + f32 BN math).
    assert jnp.allclose(out, ref, atol=3e-2, rtol=3e-2), max_err

    print("KERNEL_OK")
</pallas_src>

<mosaic_0001>
module attributes {stable_mosaic.version = 11 : i64} {
  func.func @_matmul_stats_kernel(%arg0: i32, %arg1: memref<256x128xbf16, #tpu.memory_space<vmem>>, %arg2: memref<128x128xbf16, #tpu.memory_space<vmem>>, %arg3: memref<256x128xbf16, #tpu.memory_space<vmem>>, %arg4: memref<1x2x128xf32, #tpu.memory_space<vmem>>) attributes {dimension_semantics = [#tpu.dimension_semantics<parallel>], iteration_bounds = array<i64: 2>, scalar_prefetch = 0 : i64, scratch_operands = 0 : i64, tpu.core_type = #tpu.core_type<tc>, window_params = [{transform_indices = @transform_0, window_bounds = array<i64: 256, 128>}, {pipeline_mode = #tpu.pipeline_mode<synchronous>, transform_indices = @transform_1, window_bounds = array<i64: 128, 128>}, {transform_indices = @transform_2, window_bounds = array<i64: 256, 128>}, {transform_indices = @transform_3, window_bounds = array<i64: 1, 2, 128>}]} {
    %c0 = arith.constant 0 : index
    %c0_0 = arith.constant 0 : index
    %0 = vector.load %arg1[%c0, %c0_0] : memref<256x128xbf16, #tpu.memory_space<vmem>>, vector<256x128xbf16>
    %c0_1 = arith.constant 0 : index
    %c0_2 = arith.constant 0 : index
    %1 = vector.load %arg2[%c0_1, %c0_2] : memref<128x128xbf16, #tpu.memory_space<vmem>>, vector<128x128xbf16>
    %cst = arith.constant dense<0.000000e+00> : vector<256x128xf32>
    %2 = tpu.matmul %0, %1, %cst {dimension_numbers = #tpu.dot_dimension_numbers<[1], [0], [0], [1], [0, 0, 1, 1], [], []>} : vector<256x128xbf16>, vector<128x128xbf16>, vector<256x128xf32> -> vector<256x128xf32>
    %3 = arith.truncf %2 : vector<256x128xf32> to vector<256x128xbf16>
    %c0_3 = arith.constant 0 : index
    %c0_4 = arith.constant 0 : index
    %4 = vector.load %arg3[%c0_3, %c0_4] : memref<256x128xbf16, #tpu.memory_space<vmem>>, vector<256x128xbf16>
    tpu.vector_store %arg3[%c0_3, %c0_4], %3 {strides = array<i32>} : memref<256x128xbf16, #tpu.memory_space<vmem>>, vector<256x128xbf16>,
    %cst_5 = arith.constant dense<0.000000e+00> : vector<128xf32>
    %5 = vector.multi_reduction <add>, %2, %cst_5 [0] : vector<256x128xf32> to vector<128xf32>
    %6 = vector.shape_cast %5 : vector<128xf32> to vector<1x128xf32>
    %c0_6 = arith.constant 0 : index
    %c0_7 = arith.constant 0 : index
    %c0_8 = arith.constant 0 : index
    %7 = vector.load %arg4[%c0_6, %c0_7, %c0_8] : memref<1x2x128xf32, #tpu.memory_space<vmem>>, vector<1x1x128xf32>
    %8 = vector.shape_cast %7 : vector<1x1x128xf32> to vector<1x128xf32>
    %9 = vector.shape_cast %6 : vector<1x128xf32> to vector<1x1x128xf32>
    tpu.vector_store %arg4[%c0_6, %c0_7, %c0_8], %9 {strides = array<i32>} : memref<1x2x128xf32, #tpu.memory_space<vmem>>, vector<1x1x128xf32>,
    %10 = arith.mulf %2, %2 : vector<256x128xf32>
    %cst_9 = arith.constant dense<0.000000e+00> : vector<128xf32>
    %11 = vector.multi_reduction <add>, %10, %cst_9 [0] : vector<256x128xf32> to vector<128xf32>
    %12 = vector.shape_cast %11 : vector<128xf32> to vector<1x128xf32>
    %c0_10 = arith.constant 0 : index
    %c1 = arith.constant 1 : index
    %c0_11 = arith.constant 0 : index
    %13 = vector.load %arg4[%c0_10, %c1, %c0_11] : memref<1x2x128xf32, #tpu.memory_space<vmem>>, vector<1x1x128xf32>
    %14 = vector.shape_cast %13 : vector<1x1x128xf32> to vector<1x128xf32>
    %15 = vector.shape_cast %12 : vector<1x128xf32> to vector<1x1x128xf32>
    tpu.vector_store %arg4[%c0_10, %c1, %c0_11], %15 {strides = array<i32>} : memref<1x2x128xf32, #tpu.memory_space<vmem>>, vector<1x1x128xf32>,
    return
  }
  func.func @transform_0(%arg0: i32) -> (i32, i32) {
    %c0_i32 = arith.constant 0 : i32
    %c0_i32_0 = arith.constant 0 : i32
    return %arg0, %c0_i32 : i32, i32
  }
  func.func @transform_1(%arg0: i32) -> (i32, i32) {
    %c0_i32 = arith.constant 0 : i32
    %c0_i32_0 = arith.constant 0 : i32
    %c0_i32_1 = arith.constant 0 : i32
    return %c0_i32, %c0_i32_0 : i32, i32
  }
  func.func @transform_2(%arg0: i32) -> (i32, i32) {
    %c0_i32 = arith.constant 0 : i32
    %c0_i32_0 = arith.constant 0 : i32
    return %arg0, %c0_i32 : i32, i32
  }
  func.func @transform_3(%arg0: i32) -> (i32, i32, i32) {
    %c0_i32 = arith.constant 0 : i32
    %c0_i32_0 = arith.constant 0 : i32
    %c0_i32_1 = arith.constant 0 : i32
    return %arg0, %c0_i32, %c0_i32_0 : i32, i32, i32
  }
}

</mosaic_0001>

<bundles_post_ra>
// kernel: tpu_custom_call.1
= control target key start
LH: loop header
LB: loop body
LE: loop exit
PB: predicated region body
PF: predicated region fallthrough
CT: control target
= control target key end

     0   :  { %9 = vsyncpa [#allocation3], 0  ;;  %s1680_s0 = inlined_call_operand.hbm [shape: bf16[512,128], index: 0, kind: input, shape index: {}]   ;;  %s1681_s1 = inlined_call_operand.hbm [shape: bf16[128,128], index: 1, kind: input, shape index: {}]   ;;  %s1682_s2 = inlined_call_operand.hbm [shape: bf16[512,128], index: 2, kind: output, shape index: {0}]   ;;  %s1683_s3 = inlined_call_operand.hbm [shape: f32[2,2,128], index: 3, kind: output, shape index: {1}]  }
   0x1   :  { %11 = vsyncpa [#allocation3 + $0x1], 0 }
   0x2   :  { %12 = vsyncpa [#allocation6], 0 }
   0x3   :  { %13 = vsyncpa [#allocation4], 0 }
   0x4   :  { %15 = vsyncpa [#allocation4 + $0x1], 0 }
   0x5   :  { %16 = vsyncpa [#allocation9], 0 }
   0x6   :  { %18 = vsyncpa [#allocation9 + $0x1], 0  ;;  %s1340_s12 = smov 0   ;;  %s1342_s13 = smov 0  }
   0x7   :  { %s1344_s14 = smov 0   ;;  %s1346_s15 = smov 0  }
   0x8 LB: > { %s1361_s16 = sadd.s32 4294967295, %s1313_s15   ;;  %s825_s17 = sadd.s32 4294967294, %s1313_s15   ;;  %s1313_s15 = sphi %s1346_s15, %s1693_s15   ;;  %s1309_s14 = sphi %s1344_s14, %s1692_s14   ;;  %s1305_s13 = sphi %s1342_s13, %s1691_s13   ;;  %s1301_s12 = sphi %s1340_s12, %s1690_s12  }
   0x9   : > { %p44_p0 = scmp.ne.s32.totalorder %s1305_s13, %s1301_s12  ;;  %p45_p1 = scmp.eq.s32.totalorder %s1361_s16, 0 }
   0xa   : > { %p89_p2 = scmp.eq.s32.totalorder %s1361_s16, 1  ;;  %p95_p3 = scmp.eq.s32.totalorder %s825_s17, 1 }
   0xb   : > { %p1370_p4 = por %p45_p1, %p44_p0  ;;  %p826_p5 = scmp.ge.s32.totalorder %s1313_s15, 1 }
   0xc   : > { %p1375_p6 = por %p95_p3, %p44_p0  ;;  %p128_p7 = scmp.lt.s32.totalorder %s1313_s15, 3 }
   0xd   : > { %s139_s22 = sshll.u32 %s1681_s1, 4  ;;  %s1315_s24 = smov [#allocation5]   ;;  %s140_s22 = int_to_ptr.hbm [resolvable:$true] %s139_s22 }
   0xe   : > { %p1383_p8 = pnand %p826_p5, %p128_p7  ;;  %s141_s25 = sshll.u32 %s1315_s24, 4  ;;  %s142_s25 = int_to_ptr.vmem [resolvable:$true] %s141_s25 }
   0xf   : > { %s1393_s26 = sadd.s32 1, %s1313_s15   ;;  %s1316_s27 = smov 64  }
  0x10   : > { %p1095_p9 = pneg %p1383_p8  ;;  %s1317_s28 = smov 4  }
  0x11   : > { %s28_s29 = ssub.s32 %s1313_s15, %s1393_s26  ;;  %s31_s30 = sadd.s32 1, %s1309_s14 }
  0x12   : > { %p1096_p10 = pnand %p1095_p9, %p45_p1  ;;  %p29_p12 = scmp.eq.s32.totalorder %s28_s29, 0 }
  0x13   : > { %p38_p13 = scmp.ne.s32.totalorder %s1309_s14, %s1305_s13  ;;  %p39_p0 = scmp.eq.s32.totalorder %s1313_s15, 0 }
  0x14   : > { %1098 = dma.hbm_to_vmem [thread:$0]  (!%p1096_p10), %s140_s22, 1024, %s142_s25, [#allocation6], %s1316_s27, %s1316_s27, %s1317_s28  }
  0x15   : > { %s1405_s4 = scalar_select %p29_p12, %s1309_s14, %s31_s30  }
  0x16   : > { %p1409_p3 = por %p89_p2, %p38_p13  ;;  %p1111_p5 = scmp.lt.s32.totalorder %s1313_s15, 2 }
  0x17   : > { %s155_s6 = sand.u32 1, %s1309_s14   ;;  %s940_s7 = sshll.u32 %s1313_s15, 7 }
  0x18   : > { %p40_p7 = por %p39_p0, %p38_p13  ;;  %s829_s8 = sshll.u32 %s155_s6, 7 }
  0x19   : > { %s164_s11 = scalar_lea.hbm %s1680_s0, %s940_s7  ;;  %s159_s20 = scalar_lea.vmem [#allocation2], %s829_s8 }
  0x1a   : > { %s165_s17 = sshll.u32 %s164_s11, 4  ;;  %s167_s21 = sshll.u32 %s159_s20, 4  ;;  %s166_s17 = int_to_ptr.hbm [resolvable:$true] %s165_s17  ;;  %s168_s21 = int_to_ptr.vmem [resolvable:$true] %s167_s21 }
  0x1b   : > { %p1419_p9 = pnand %p1111_p5, %p40_p7  ;;  %s156_s24 = scalar_lea.sflag [#allocation3], %s155_s6 }
  0x1c   : > { %s1181_s25 = sshra.s32 %s166_s17, 4  ;;  %s1188_s8 = scalar_lea.hbm %s1680_s0, 256  ;;  %s1182_s25 = int_to_ptr.hbm [resolvable:$true] %s1181_s25 }
  0x1d   : > { %s1183_s29 = scalar_lea.hbm %s1182_s25, 128  ;;  %p1185_p10 = pneg %p1419_p9 }
  0x1e   : > { %p1184_p2 = scmp.ne.s32.totalorder %s1182_s25, %s1183_s29  ;;  %p1189_p0 = scmp.lt.s32.totalorder %s1182_s25, %s1680_s0 }
  0x1f   : > { %p1190_p5 = scmp.lt.s32.totalorder %s1188_s8, %s1183_s29 }
  0x20   : > { %p1186_p12 = pnand %p1185_p10, %p1184_p2 }
  0x21   : > { %p1191_p7 = por %p1190_p5, %p1189_p0 }
  0x22   : > { %p1187_p13 = pneg %p1186_p12 }
  0x24   : > { %p1192_p11 = pnand %p1191_p7, %p1187_p13 }
  0x26   : > { %1195 = shalt.err (!%p1192_p11)
}
  0x27   : > { %1102 = dma.hbm_to_vmem [thread:$0]  (!%p1419_p9), %s166_s17, 2048, %s168_s21, %s156_s24, %s1316_s27, %s1316_s27, %s1317_s28  }
  0x28   : > { %179 = sbr.rel (%p1383_p8) target bundleno = 329 (0x149), region = 28  ;;  %s1439_s6 = sand.u32 (!%p1383_p8), 1, %s1305_s13  }
  0x29   : > { %s833_s11 = sshll.u32 (!%p1383_p8), %s1439_s6, 7  ;;  %s182_s20 = scalar_lea.sflag (!%p1383_p8), [#allocation3], %s1439_s6 }
  0x2a   : > { %s1445_s25 = scalar_lea.vmem (!%p1383_p8), [#allocation2], %s833_s11 }
  0x2d   : > { %1284 = dma.done.wait (%p1370_p4), %s182_s20, 2048  }
  0x2e   : > { %1286 = vsyncadd (%p1370_p4), %s182_s20, 4294965248 }
  0x2f   : > { %1288 = dma.done.wait (%p45_p1), [#allocation6], 1024  }
  0x30   : > { %1290 = vsyncadd (%p45_p1), [#allocation6], 4294966272  ;;  %v964_v0 = vld [vmem:[#allocation5 + $0x38] sm:$0xff]  ;;  %v963_v1 = vld [vmem:[#allocation5 + $0x30] sm:$0xff]  ;;  %s1483_s18 = scalar_lea.vmem [#allocation7], %s833_s11  ;;  %s965_s23 = sshll.u32 %s1361_s16, 7 }
  0x31   : > { %413 = vmatpush.bf16.msra.mxu0 %v964_v0  ;;  %1061 = vmatpush.bf16.msra.mxu1 %v964_v0  ;;  %v962_v2 = vld [vmem:[#allocation5 + $0x28] sm:$0xff]  ;;  %v961_v3 = vld [vmem:[#allocation5 + $0x20] sm:$0xff]  ;;  %v960_v4 = vld [vmem:[#allocation5 + $0x18] sm:$0xff]  ;;  %s691_s17 = scalar_lea.hbm %s1682_s2, %s965_s23  ;;  %s692_s21 = sshll.u32 %s1483_s18, 4  ;;  %s1570_s21 = int_to_ptr.vmem [resolvable:$true] %s692_s21 }
  0x32   : > { %1062 = vmatpush.bf16.msra.mxu2 %v964_v0  ;;  %1063 = vmatpush.bf16.msra.mxu3 %v964_v0  ;;  %v959_v5 = vld [vmem:[#allocation5 + $0x10] sm:$0xff]  ;;  %v958_v6 = vld [vmem:[#allocation5 + $0x8] sm:$0xff]  ;;  %v957_v7 = vld [vmem:[#allocation5] sm:$0xff]  ;;  %s694_s22 = sshll.u32 %s691_s17, 4  ;;  %s675_s24 = scalar_lea.sflag [#allocation4], %s1439_s6  ;;  %s1572_s22 = int_to_ptr.hbm [resolvable:$true] %s694_s22 }
  0x33   : > { %v941_v8 = vld [vmem:[%s1445_s25] sm:$0xff]  ;;  %v942_v12 = vld [vmem:[%s1445_s25 + $0x8] sm:$0xff]  ;;  %v943_v16 = vld [vmem:[%s1445_s25 + $0x10] sm:$0xff]  ;;  %s1225_s29 = sshra.s32 %s1572_s22, 4  ;;  %s1231_s9 = scalar_lea.hbm %s1682_s2, 256  ;;  %s1226_s29 = int_to_ptr.hbm [resolvable:$true] %s1225_s29 }
  0x34   : > { %v945_v9 = vld [vmem:[%s1445_s25 + $0x20] sm:$0xff]  ;;  %v946_v13 = vld [vmem:[%s1445_s25 + $0x28] sm:$0xff]  ;;  %v947_v17 = vld [vmem:[%s1445_s25 + $0x30] sm:$0xff]  ;;  %s1227_s30 = scalar_lea.hbm %s1226_s29, 128  ;;  %p1232_p11 = scmp.lt.s32.totalorder %s1226_s29, %s1682_s2 }
  0x35   : > { %414 = vmatpush.bf16.msra.mxu0 %v963_v1  ;;  %1064 = vmatpush.bf16.msra.mxu1 %v963_v1  ;;  %v949_v10 = vld [vmem:[%s1445_s25 + $0x40] sm:$0xff]  ;;  %v950_v14 = vld [vmem:[%s1445_s25 + $0x48] sm:$0xff]  ;;  %v951_v18 = vld [vmem:[%s1445_s25 + $0x50] sm:$0xff]  ;;  %p1228_p1 = scmp.ne.s32.totalorder %s1226_s29, %s1227_s30  ;;  %p1233_p9 = scmp.lt.s32.totalorder %s1231_s9, %s1227_s30 }
  0x36   : > { %1065 = vmatpush.bf16.msra.mxu2 %v963_v1  ;;  %1066 = vmatpush.bf16.msra.mxu3 %v963_v1  ;;  %v953_v11 = vld [vmem:[%s1445_s25 + $0x60] sm:$0xff]  ;;  %v954_v15 = vld [vmem:[%s1445_s25 + $0x68] sm:$0xff]  ;;  %v955_v19 = vld [vmem:[%s1445_s25 + $0x70] sm:$0xff] }
  0x37   : > { %v944_v20 = vld [vmem:[%s1445_s25 + $0x18] sm:$0xff]  ;;  %p1229_p4 = pnand %p1228_p1, %p1409_p3  ;;  %p1234_p2 = por %p1233_p9, %p1232_p11 }
  0x38   : > { %v948_v21 = vld [vmem:[%s1445_s25 + $0x38] sm:$0xff] }
  0x39   : > { %415 = vmatpush.bf16.msra.mxu0 %v962_v2  ;;  %1067 = vmatpush.bf16.msra.mxu1 %v962_v2  ;;  %v952_v22 = vld [vmem:[%s1445_s25 + $0x58] sm:$0xff]  ;;  %p1230_p8 = pneg %p1229_p4 }
  0x3a   : > { %1068 = vmatpush.bf16.msra.mxu2 %v962_v2  ;;  %1069 = vmatpush.bf16.msra.mxu3 %v962_v2  ;;  %v956_v23 = vld [vmem:[%s1445_s25 + $0x78] sm:$0xff] }
  0x3b   : > { %p1235_p10 = pnand %p1234_p2, %p1230_p8 }
  0x3d   : > { %416 = vmatpush.bf16.msra.mxu0 %v961_v3  ;;  %1070 = vmatpush.bf16.msra.mxu1 %v961_v3 }
  0x3e   : > { %1071 = vmatpush.bf16.msra.mxu2 %v961_v3  ;;  %1072 = vmatpush.bf16.msra.mxu3 %v961_v3 }
  0x41   : > { %417 = vmatpush.bf16.msra.mxu0 %v960_v4  ;;  %1073 = vmatpush.bf16.msra.mxu1 %v960_v4 }
  0x42   : > { %1074 = vmatpush.bf16.msra.mxu2 %v960_v4  ;;  %1075 = vmatpush.bf16.msra.mxu3 %v960_v4 }
  0x45   : > { %418 = vmatpush.bf16.msra.mxu0 %v959_v5  ;;  %1076 = vmatpush.bf16.msra.mxu1 %v959_v5 }
  0x46   : > { %1077 = vmatpush.bf16.msra.mxu2 %v959_v5  ;;  %1078 = vmatpush.bf16.msra.mxu3 %v959_v5 }
  0x49   : > { %419 = vmatpush.bf16.msra.mxu0 %v958_v6  ;;  %1079 = vmatpush.bf16.msra.mxu1 %v958_v6 }
  0x4a   : > { %1080 = vmatpush.bf16.msra.mxu2 %v958_v6  ;;  %1081 = vmatpush.bf16.msra.mxu3 %v958_v6 }
  0x4d   : > { %420 = vmatpush.bf16.msra.mxu0 %v957_v7  ;;  %1082 = vmatpush.bf16.msra.mxu1 %v957_v7 }
  0x4e   : > { %1083 = vmatpush.bf16.msra.mxu2 %v957_v7  ;;  %1084 = vmatpush.bf16.msra.mxu3 %v957_v7 }
  0x50   : > { %421 = vmatmul.bf16.vlgmr.msra.gmra.mxu0 %v941_v8  ;;  %441 = vmatmul.bf16.vlgmr.msra.gmra.mxu1 %v945_v9 }
  0x51   : > { %461 = vmatmul.bf16.vlgmr.msra.gmra.mxu2 %v949_v10  ;;  %481 = vmatmul.bf16.vlgmr.msra.gmra.mxu3 %v953_v11 }
  0x60   : > { %426 = vmatmul.bf16.gmra.mxu0 %v942_v12  ;;  %446 = vmatmul.bf16.gmra.mxu1 %v946_v13 }
  0x61   : > { %466 = vmatmul.bf16.gmra.mxu2 %v950_v14  ;;  %486 = vmatmul.bf16.gmra.mxu3 %v954_v15 }
  0x70   : > { %431 = vmatmul.bf16.gmra.mxu0 %v943_v16  ;;  %451 = vmatmul.bf16.gmra.mxu1 %v947_v17 }
  0x71   : > { %471 = vmatmul.bf16.gmra.mxu2 %v951_v18  ;;  %491 = vmatmul.bf16.gmra.mxu3 %v955_v19 }
  0x80   : > { %436 = vmatmul.bf16.gmra.mxu0 %v944_v20  ;;  %456 = vmatmul.bf16.gmra.mxu1 %v948_v21 }
  0x81   : > { %476 = vmatmul.bf16.gmra.mxu2 %v952_v22  ;;  %496 = vmatmul.bf16.gmra.mxu3 %v956_v23 }
  0xcd   : > { %v422_v24 = vpop.f32.mrf.mxu0  ;;  %v1471_v25 = vpop.f32.mrf.mxu1 }
  0xce   : > { %v604_v57 = vmul.f32 %v422_v24, %v422_v24 }
  0xd4   : > { %v1473_v26 = vpop.f32.mrf.mxu2  ;;  %v1479_v31 = vpop.f32.mrf.mxu3 }
  0xd5   : > { %v424_v27 = vpop.f32.mrf.mxu0  ;;  %v1475_v28 = vpop.f32.mrf.mxu1 }
  0xd6   : > { %v969_v29 = vpack.c.bf16 %v424_v27, %v422_v24  ;;  %v989_v30 = vpack.c.bf16 %v1475_v28, %v1471_v25  ;;  %v605_v56 = vmul.f32 %v424_v27, %v424_v27  ;;  %v566_v59 = vadd.f32 %v424_v27, %v422_v24 }
  0xd7   : > { %v612_v27 = vmul.f32 %v1471_v25, %v1471_v25 }
  0xd8   : > { %970 = vst [vmem:[%s1483_s18] sm:$0xff] %v969_v29   ;;  %v636_v60 = vadd.f32 %v605_v56, %v604_v57 }
  0xd9   : > { %1049 = vst [vmem:[%s1483_s18 + $0x20] sm:$0xff] %v989_v30  }
  0xdc   : > { %v1487_v32 = vpop.f32.mrf.mxu2  ;;  %v1493_v36 = vpop.f32.mrf.mxu3 }
  0xdd   : > { %v427_v33 = vpop.f32.mrf.mxu0  ;;  %v1489_v34 = vpop.f32.mrf.mxu1  ;;  %v1009_v35 = vpack.c.bf16 %v1487_v32, %v1473_v26  ;;  %v1029_v37 = vpack.c.bf16 %v1493_v36, %v1479_v31 }
  0xde   : > { %v606_v58 = vmul.f32 %v427_v33, %v427_v33  ;;  %v567_v62 = vadd.f32 %v566_v59, %v427_v33 }
  0xdf   : > { %1053 = vst [vmem:[%s1483_s18 + $0x40] sm:$0xff] %v1009_v35  }
  0xe0   : > { %1057 = vst [vmem:[%s1483_s18 + $0x60] sm:$0xff] %v1029_v37   ;;  %v637_v0 = vadd.f32 %v636_v60, %v606_v58 }
  0xe4   : > { %v1499_v38 = vpop.f32.mrf.mxu2  ;;  %v1505_v43 = vpop.f32.mrf.mxu3 }
  0xe5   : > { %v429_v39 = vpop.f32.mrf.mxu0  ;;  %v1501_v40 = vpop.f32.mrf.mxu1 }
  0xe6   : > { %v974_v41 = vpack.c.bf16 %v429_v39, %v427_v33  ;;  %v994_v42 = vpack.c.bf16 %v1501_v40, %v1489_v34  ;;  %v607_v61 = vmul.f32 %v429_v39, %v429_v39  ;;  %v568_v5 = vadd.f32 %v567_v62, %v429_v39 }
  0xe7   : > { %v613_v33 = vmul.f32 %v1475_v28, %v1475_v28  ;;  %v614_v39 = vmul.f32 %v1489_v34, %v1489_v34 }
  0xe8   : > { %1046 = vst [vmem:[%s1483_s18 + $0x8] sm:$0xff] %v974_v41   ;;  %v638_v7 = vadd.f32 %v637_v0, %v607_v61 }
  0xe9   : > { %1050 = vst [vmem:[%s1483_s18 + $0x28] sm:$0xff] %v994_v42  }
  0xec   : > { %v1509_v44 = vpop.f32.mrf.mxu2  ;;  %v1515_v48 = vpop.f32.mrf.mxu3 }
  0xed   : > { %v432_v45 = vpop.f32.mrf.mxu0  ;;  %v1511_v46 = vpop.f32.mrf.mxu1  ;;  %v1014_v47 = vpack.c.bf16 %v1509_v44, %v1499_v38  ;;  %v1034_v49 = vpack.c.bf16 %v1515_v48, %v1505_v43 }
  0xee   : > { %v608_v1 = vmul.f32 %v432_v45, %v432_v45  ;;  %v569_v10 = vadd.f32 %v568_v5, %v432_v45 }
  0xef   : > { %1054 = vst [vmem:[%s1483_s18 + $0x48] sm:$0xff] %v1014_v47   ;;  %v615_v47 = vmul.f32 %v1501_v40, %v1501_v40 }
  0xf0   : > { %1058 = vst [vmem:[%s1483_s18 + $0x68] sm:$0xff] %v1034_v49   ;;  %v639_v11 = vadd.f32 %v638_v7, %v608_v1 }
  0xf4   : > { %v1521_v50 = vpop.f32.mrf.mxu2  ;;  %v1527_v55 = vpop.f32.mrf.mxu3 }
  0xf5   : > { %v434_v51 = vpop.f32.mrf.mxu0  ;;  %v1523_v52 = vpop.f32.mrf.mxu1 }
  0xf6   : > { %v979_v53 = vpack.c.bf16 %v434_v51, %v432_v45  ;;  %v999_v54 = vpack.c.bf16 %v1523_v52, %v1511_v46  ;;  %v609_v8 = vmul.f32 %v434_v51, %v434_v51  ;;  %v570_v13 = vadd.f32 %v569_v10, %v434_v51 }
  0xf8   : > { %1047 = vst [vmem:[%s1483_s18 + $0x10] sm:$0xff] %v979_v53   ;;  %v640_v14 = vadd.f32 %v639_v11, %v609_v8  ;;  %v616_v53 = vmul.f32 %v1511_v46, %v1511_v46 }
  0xf9   : > { %1051 = vst [vmem:[%s1483_s18 + $0x30] sm:$0xff] %v999_v54  }
  0xfc   : > { %v1531_v63 = vpop.f32.mrf.mxu2  ;;  %v1537_v6 = vpop.f32.mrf.mxu3 }
  0xfd   : > { %v437_v2 = vpop.f32.mrf.mxu0  ;;  %v1533_v3 = vpop.f32.mrf.mxu1  ;;  %v1019_v4 = vpack.c.bf16 %v1531_v63, %v1521_v50  ;;  %v1039_v9 = vpack.c.bf16 %v1537_v6, %v1527_v55 }
  0xfe   : > { %v610_v12 = vmul.f32 %v437_v2, %v437_v2  ;;  %v571_v15 = vadd.f32 %v570_v13, %v437_v2 }
  0xff   : > { %1055 = vst [vmem:[%s1483_s18 + $0x50] sm:$0xff] %v1019_v4  }
 0x100   : > { %1059 = vst [vmem:[%s1483_s18 + $0x70] sm:$0xff] %v1039_v9   ;;  %v641_v17 = vadd.f32 %v640_v14, %v610_v12 }
 0x104   : > { %v1543_v16 = vpop.f32.mrf.mxu2  ;;  %v1547_v24 = vpop.f32.mrf.mxu3 }
 0x105   : > { %v439_v18 = vpop.f32.mrf.mxu0  ;;  %v459_v19 = vpop.f32.mrf.mxu1 }
 0x106   : > { %v984_v20 = vpack.c.bf16 %v439_v18, %v437_v2  ;;  %v572_v21 = vadd.f32 %v571_v15, %v439_v18  ;;  %v611_v22 = vmul.f32 %v439_v18, %v439_v18  ;;  %v1004_v23 = vpack.c.bf16 %v459_v19, %v1533_v3 }
 0x108   : > { %1048 = vst [vmem:[%s1483_s18 + $0x18] sm:$0xff] %v984_v20   ;;  %v573_v29 = vadd.f32 %v572_v21, %v1471_v25  ;;  %v642_v30 = vadd.f32 %v641_v17, %v611_v22 }
 0x109   : > { %1052 = vst [vmem:[%s1483_s18 + $0x38] sm:$0xff] %v1004_v23  }
 0x10a   : > { %v574_v35 = vadd.f32 %v573_v29, %v1475_v28  ;;  %v643_v37 = vadd.f32 %v642_v30, %v612_v27 }
 0x10c   : > { %v575_v25 = vadd.f32 %v574_v35, %v1489_v34  ;;  %v644_v41 = vadd.f32 %v643_v37, %v613_v33  ;;  %v479_v42 = vpop.f32.mrf.mxu2  ;;  %v1568_v51 = vpop.f32.mrf.mxu3 }
 0x10d   : > { %v1024_v45 = vpack.c.bf16 %v479_v42, %v1543_v16  ;;  %v1044_v34 = vpack.c.bf16 %v1568_v51, %v1547_v24 }
 0x10e   : > { %v645_v49 = vadd.f32 %v644_v41, %v614_v39  ;;  %v576_v28 = vadd.f32 %v575_v25, %v1501_v40  ;;  %v617_v40 = vmul.f32 %v1523_v52, %v1523_v52 }
 0x10f   : > { %1056 = vst [vmem:[%s1483_s18 + $0x58] sm:$0xff] %v1024_v45  }
 0x110   : > { %v577_v54 = vadd.f32 %v576_v28, %v1511_v46  ;;  %v646_v56 = vadd.f32 %v645_v49, %v615_v47  ;;  %1060 = vst [vmem:[%s1483_s18 + $0x78] sm:$0xff] %v1044_v34  }
 0x112   : > { %v578_v57 = vadd.f32 %v577_v54, %v1523_v52  ;;  %v647_v58 = vadd.f32 %v646_v56, %v616_v53 }
 0x113   : > { %1238 = shalt.err (!%p1235_p10)
}
 0x114   : > { %s1318_s20 = smov 64   ;;  %s1319_s25 = smov 4   ;;  %v579_v46 = vadd.f32 %v578_v57, %v1533_v3  ;;  %v618_v52 = vmul.f32 %v1533_v3, %v1533_v3  ;;  %v648_v59 = vadd.f32 %v647_v58, %v617_v40  ;;  %v619_v62 = vmul.f32 %v459_v19, %v459_v19 }
 0x115   : > { %1091 = dma.vmem_to_hbm [thread:$0]  (%p1409_p3), %s1570_s21, 2048, %s1572_s22, %s675_s24, %s1318_s20, %s1318_s20, %s1319_s25   ;;  %v620_v0 = vmul.f32 %v1473_v26, %v1473_v26  ;;  %v621_v4 = vmul.f32 %v1487_v32, %v1487_v32  ;;  %v622_v8 = vmul.f32 %v1499_v38, %v1499_v38  ;;  %v623_v10 = vmul.f32 %v1509_v44, %v1509_v44 }
 0x116   : > { %v649_v60 = vadd.f32 %v648_v59, %v618_v52  ;;  %v580_v61 = vadd.f32 %v579_v46, %v459_v19  ;;  %v625_v15 = vmul.f32 %v1531_v63, %v1531_v63  ;;  %v626_v19 = vmul.f32 %v1543_v16, %v1543_v16  ;;  %s836_s18 = sshll.u32 %s1439_s6, 1  ;;  %s937_s23 = sshll.u32 %s1361_s16, 1 }
 0x117   : > { %v627_v21 = vmul.f32 %v479_v42, %v479_v42  ;;  %v628_v22 = vmul.f32 %v1479_v31, %v1479_v31  ;;  %v629_v27 = vmul.f32 %v1493_v36, %v1493_v36  ;;  %v630_v30 = vmul.f32 %v1505_v43, %v1505_v43  ;;  %s707_s17 = scalar_lea.hbm %s1683_s3, %s937_s23  ;;  %s218_s21 = scalar_lea.vmem [#allocation8], %s836_s18 }
 0x118   : > { %v581_v1 = vadd.f32 %v580_v61, %v1473_v26  ;;  %v650_v2 = vadd.f32 %v649_v60, %v619_v62  ;;  %v624_v26 = vmul.f32 %v1521_v50, %v1521_v50  ;;  %v631_v35 = vmul.f32 %v1515_v48, %v1515_v48  ;;  %s709_s22 = sshll.u32 %s218_s21, 4  ;;  %s711_s24 = sshll.u32 %s707_s17, 4  ;;  %s710_s22 = int_to_ptr.vmem [resolvable:$true] %s709_s22  ;;  %s712_s24 = int_to_ptr.hbm [resolvable:$true] %s711_s24 }
 0x119   : > { %s680_s16 = scalar_lea.sflag [#allocation9], %s1439_s6  ;;  %s1253_s29 = sshra.s32 %s712_s24, 4  ;;  %s1254_s29 = int_to_ptr.hbm [resolvable:$true] %s1253_s29 }
 0x11a   : > { %v582_v5 = vadd.f32 %v581_v1, %v1487_v32  ;;  %v651_v7 = vadd.f32 %v650_v2, %v620_v0  ;;  %s1255_s30 = scalar_lea.hbm %s1254_s29, 2  ;;  %s1259_s9 = scalar_lea.hbm %s1683_s3, 4 }
 0x11b   : > { %p1256_p12 = scmp.ne.s32.totalorder %s1254_s29, %s1255_s30  ;;  %p1260_p5 = scmp.lt.s32.totalorder %s1254_s29, %s1683_s3 }
 0x11c   : > { %v583_v3 = vadd.f32 %v582_v5, %v1499_v38  ;;  %v652_v9 = vadd.f32 %v651_v7, %v621_v4  ;;  %p1261_p7 = scmp.lt.s32.totalorder %s1259_s9, %s1255_s30 }
 0x11d   : > { %p1257_p13 = pnand %p1256_p12, %p1409_p3 }
 0x11e   : > { %v653_v11 = vadd.f32 %v652_v9, %v622_v8  ;;  %v584_v12 = vadd.f32 %v583_v3, %v1509_v44  ;;  %p1262_p1 = por %p1261_p7, %p1260_p5 }
 0x11f   : > { %p1258_p0 = pneg %p1257_p13 }
 0x120   : > { %v585_v13 = vadd.f32 %v584_v12, %v1521_v50  ;;  %v654_v14 = vadd.f32 %v653_v11, %v623_v10 }
 0x121   : > { %p1263_p4 = pnand %p1262_p1, %p1258_p0 }
 0x122   : > { %v586_v32 = vadd.f32 %v585_v13, %v1531_v63  ;;  %v655_v17 = vadd.f32 %v654_v14, %v624_v26 }
 0x124   : > { %v656_v38 = vadd.f32 %v655_v17, %v625_v15  ;;  %v587_v18 = vadd.f32 %v586_v32, %v1543_v16 }
 0x126   : > { %v657_v20 = vadd.f32 %v656_v38, %v626_v19  ;;  %v588_v44 = vadd.f32 %v587_v18, %v479_v42 }
 0x128   : > { %v589_v50 = vadd.f32 %v588_v44, %v1479_v31  ;;  %v658_v23 = vadd.f32 %v657_v20, %v627_v21  ;;  %v632_v31 = vmul.f32 %v1527_v55, %v1527_v55 }
 0x12a   : > { %v590_v63 = vadd.f32 %v589_v50, %v1493_v36  ;;  %v659_v29 = vadd.f32 %v658_v23, %v628_v22 }
 0x12c   : > { %v591_v16 = vadd.f32 %v590_v63, %v1505_v43  ;;  %v660_v33 = vadd.f32 %v659_v29, %v629_v27  ;;  %v633_v43 = vmul.f32 %v1537_v6, %v1537_v6 }
 0x12e   : > { %v661_v37 = vadd.f32 %v660_v33, %v630_v30  ;;  %v592_v39 = vadd.f32 %v591_v16, %v1515_v48  ;;  %v634_v48 = vmul.f32 %v1547_v24, %v1547_v24 }
 0x130   : > { %v593_v25 = vadd.f32 %v592_v39, %v1527_v55  ;;  %v662_v36 = vadd.f32 %v661_v37, %v631_v35  ;;  %v635_v55 = vmul.f32 %v1568_v51, %v1568_v51 }
 0x132   : > { %v594_v41 = vadd.f32 %v593_v25, %v1537_v6  ;;  %v663_v42 = vadd.f32 %v662_v36, %v632_v31 }
 0x134   : > { %v664_v45 = vadd.f32 %v663_v42, %v633_v43  ;;  %v595_v47 = vadd.f32 %v594_v41, %v1547_v24 }
 0x136   : > { %v665_v49 = vadd.f32 %v664_v45, %v634_v48  ;;  %v596_v28 = vadd.f32 %v595_v47, %v1568_v51 }
 0x138   : > { %v597_v34 = vrot.slane %v596_v28, 4  ;;  %v666_v53 = vadd.f32 %v665_v49, %v635_v55 }
 0x13a   : > { %v598_v54 = vadd.f32 %v597_v34, %v596_v28  ;;  %v667_v56 = vrot.slane %v666_v53, 4 }
 0x13c   : > { %v599_v6 = vrot.slane %v598_v54, 2  ;;  %v668_v40 = vadd.f32 %v667_v56, %v666_v53 }
 0x13e   : > { %v600_v57 = vadd.f32 %v599_v6, %v598_v54  ;;  %v669_v58 = vrot.slane %v668_v40, 2 }
 0x140   : > { %v601_v24 = vrot.slane %v600_v57, 1  ;;  %v670_v46 = vadd.f32 %v669_v58, %v668_v40 }
 0x142   : > { %v602_v51 = vadd.f32 %v601_v24, %v600_v57  ;;  %v671_v52 = vrot.slane %v670_v46, 1 }
 0x144   : > { %v672_v59 = vadd.f32 %v671_v52, %v670_v46  ;;  %603 = vst [vmem:[%s218_s21] sm:$0x1] %v602_v51 }
 0x146   : > { %673 = vst [vmem:[%s218_s21 + $0x1] sm:$0x1] %v672_v59 }
 0x147   : > { %1266 = shalt.err (!%p1263_p4)
}
 0x148   : > { %1092 = dma.vmem_to_hbm [thread:$0]  (%p1409_p3), %s710_s22, 32, %s712_s24, %s680_s16  }
 0x149 PF: > { %s723_s6 = sand.u32 1, %s1301_s12   ;;  %p1689_p8 = scmp.ge.s32.totalorder %s1313_s15, 2 }
 0x14a   : > { %s724_s20 = scalar_lea.sflag [#allocation4], %s723_s6 }
 0x14b   : > { %p1104_p11 = pnand %p1689_p8, %p1375_p6 }
 0x14d   : > { %p1105_p9 = pneg %p1104_p11 }
 0x14f   : > { %1292 = dma.done.wait (%p1105_p9), %s724_s20, 2048  }
 0x150   : > { %1294 = vsyncadd (%p1105_p9), %s724_s20, 4294965248  ;;  %s734_s25 = scalar_lea.sflag [#allocation9], %s723_s6 }
 0x151   : > { %1296 = dma.done.wait (%p1105_p9), %s734_s25, 32  }
 0x152   : > { %1298 = vsyncadd (%p1105_p9), %s734_s25, 4294967264  ;;  %p21_p3 = scmp.ge.s32.totalorder %s1393_s26, 4   ;;  %s1690_s12 = smov %s1305_s13 }
 0x153   : > { %s1691_s13 = smov %s1309_s14  ;;  %s1692_s14 = smov %s1405_s4 }
 0x154   : > { %s1693_s15 = smov %s1393_s26  ;;  %23 = sbr.rel (!%p21_p3) target bundleno = 8 (0x8), region = 94 }
 0x159   :  { %740 = vsyncpa [#allocation3], 1 }
 0x15a   :  { %742 = vsyncpa [#allocation3 + $0x1], 1 }
 0x15b   :  { %743 = vsyncpa [#allocation6], 1 }
 0x15c   :  { %744 = vsyncpa [#allocation4], 1 }
 0x15d   :  { %746 = vsyncpa [#allocation4 + $0x1], 1 }
 0x15e   :  { %747 = vsyncpa [#allocation9], 1 }
 0x15f   :  { %749 = vsyncpa [#allocation9 + $0x1], 1 }

</bundles_post_ra>
